<compile_context>
chip_gen: v5e
topology: v5e:2x2
jax: 0.10.0
libtpu: 0.0.40
codegen_flags: <defaults>
</compile_context>

<pallas_src>
import functools

import jax
import jax.numpy as jnp
from jax.experimental import pallas as pl
from jax.experimental.pallas import tpu as pltpu

_LANES = 128
_MIN_GRID_STEPS = 4            # keep at least this many blocks once it pays off
_MIN_SPLIT_BYTES = 512 * 1024  # below this, a single full-extent block is fine
# Scoped-VMEM cap: 2 arrays x double-buffer x 8 MiB = 32 MiB worst case fits;
# 48 MiB leaves 16 MiB headroom on v7x (64 MiB physical) and is far below the
# 128 MiB physical VMEM of v5e/v6e.
_VMEM_LIMIT_BYTES = 48 * 1024 * 1024


def _sublane_multiple(dtype) -> int:
    # 8 sublanes for 32-bit, 16 for 16-bit (bf16), 32 for 8-bit dtypes.
    itemsize = jnp.dtype(dtype).itemsize
    return max(8, 32 // max(itemsize, 1))


def _per_buffer_block_bytes() -> int:
    """Per-buffer block size, tuned per chip generation.

    v7x (64 MiB VMEM, ~3.2 TB/s HBM): ~8 MiB blocks keep the fixed ~0.35 us
    per-grid-step overhead under ~7% of the DMA time. v5e/v6e (128 MiB VMEM,
    0.8-1.4 TB/s HBM): 4 MiB blocks are already within a few % of roofline.
    """
    try:
        vmem = pltpu.get_tpu_info().vmem_capacity_bytes
    except Exception:
        return 4 * 1024 * 1024  # conservative, correct on every generation
    if vmem <= 64 * 1024 * 1024:
        return 8 * 1024 * 1024  # v7x-class
    return 4 * 1024 * 1024      # v5e / v6e


def _pick_tile_rows(rows: int, sub: int, itemsize: int, block_bytes: int) -> int:
    """Rows of 128 lanes per block: sublane-aligned, within the per-buffer VMEM
    budget, and split into >= _MIN_GRID_STEPS blocks once the tensor is big
    enough to benefit from pipelined DMA overlap (and dual-TC sharding on v7x).
    """
    row_bytes = _LANES * itemsize
    if rows * row_bytes < _MIN_SPLIT_BYTES:
        return rows  # tiny tensor: one full-extent block, pipelining not worth it
    budget = max(sub, (block_bytes // row_bytes) // sub * sub)
    split = pl.cdiv(rows, _MIN_GRID_STEPS)
    split += (-split) % sub  # keep the dtype's sublane packing
    return max(sub, min(budget, split))


def _coeff_sigmoid_kernel(x_ref, o_ref, *, coeff):
    # Elementwise hot path: sigmoid on the EUP slot, scale on the VPU — both
    # hidden under the HBM DMA roofline. Compute in f32 and cast at the store.
    x = x_ref[...].astype(jnp.float32)
    o_ref[...] = (jax.nn.sigmoid(x) * coeff).astype(o_ref.dtype)


def coeff_sigmoid(x, coeff=12, *, donate_input=False):
    """y = sigmoid(x) * coeff, elementwise; same shape/dtype as x (NCHW ok).

    Set donate_input=True only when the caller no longer needs `x` (e.g. it is
    donated through jit); the output then reuses x's HBM allocation.
    """
    orig_shape = x.shape
    dtype = x.dtype
    n = x.size
    if n == 0:
        return x

    itemsize = jnp.dtype(dtype).itemsize
    sub = _sublane_multiple(dtype)
    block_bytes = _per_buffer_block_bytes()

    x_flat = x.reshape(-1)  # layout-preserving reshape: no HBM traffic

    if n % _LANES == 0:
        # Common path: lane-dense (rows, 128) 2-D slab, sublane-aligned tiles.
        rows = n // _LANES
        arr = x_flat.reshape(rows, _LANES)
        tile_rows = _pick_tile_rows(rows, sub, itemsize, block_bytes)
        grid = (pl.cdiv(rows, tile_rows),)
        block_shape = (tile_rows, _LANES)
        index_map = lambda i: (i, 0)
        out_struct = jax.ShapeDtypeStruct((rows, _LANES), dtype)
    else:
        # Ragged path: stream the unpadded flat array with 1-D blocks (multiple
        # of 128 lanes) and let Pallas mask the partial last block. No
        # concat/slice, so ragged sizes pay the same 2-pass HBM traffic as the
        # aligned path.
        rows = pl.cdiv(n, _LANES)
        tile_rows = _pick_tile_rows(rows, sub, itemsize, block_bytes)
        tile_elems = tile_rows * _LANES
        if tile_elems >= n:
            tile_elems = n  # single full-extent block (always a legal shape)
        arr = x_flat
        grid = (pl.cdiv(n, tile_elems),)
        block_shape = (tile_elems,)
        index_map = lambda i: (i,)
        out_struct = jax.ShapeDtypeStruct((n,), dtype)

    kernel = functools.partial(_coeff_sigmoid_kernel, coeff=float(coeff))

    cost = pl.CostEstimate(
        flops=6 * n,           # ~exp + add + div + mul per element (VPU-equiv)
        transcendentals=n,
        bytes_accessed=2 * n * itemsize,
    )

    y = pl.pallas_call(
        kernel,
        out_shape=out_struct,
        grid_spec=pltpu.PrefetchScalarGridSpec(
            num_scalar_prefetch=0,
            grid=grid,
            in_specs=[pl.BlockSpec(block_shape, index_map)],
            out_specs=pl.BlockSpec(block_shape, index_map),
        ),
        compiler_params=pltpu.CompilerParams(
            # Single streaming axis; "parallel" lets the runtime shard grid
            # steps across both TensorCores on v7x (no-op on v5e/v6e, 1 TC).
            dimension_semantics=("parallel",),
            vmem_limit_bytes=_VMEM_LIMIT_BYTES,
        ),
        cost_estimate=cost,
        input_output_aliases={0: 0} if donate_input else {},
    )(arr)

    return y.reshape(orig_shape)


if __name__ == "__main__":
    key = jax.random.PRNGKey(0)
    k0, k1, k2, k3 = jax.random.split(key, 4)

    # Primary check: small NCHW input consistent with the PyTorch module.
    x = jax.random.normal(k0, (2, 4, 16, 16), dtype=jnp.float32)
    y = coeff_sigmoid(x, coeff=12)
    jax.block_until_ready(y)
    y_ref = jax.nn.sigmoid(x) * 12.0
    assert y.shape == x.shape and y.dtype == x.dtype
    assert jnp.allclose(y, y_ref, atol=1e-5, rtol=1e-5)

    # Small ragged size (not a multiple of 128): single full-extent 1-D block,
    # no padding traffic.
    x_r = jax.random.normal(k1, (3, 5, 7, 11), dtype=jnp.float32)
    y_r = coeff_sigmoid(x_r, coeff=12)
    jax.block_until_ready(y_r)
    assert jnp.allclose(y_r, jax.nn.sigmoid(x_r) * 12.0, atol=1e-5, rtol=1e-5)

    # Aligned multi-block grid (pipelined 2-D lane-dense path, >= 4 steps).
    x_b = jax.random.normal(k2, (1, 8, 320, 256), dtype=jnp.float32)
    y_b = coeff_sigmoid(x_b, coeff=12)
    jax.block_until_ready(y_b)
    assert jnp.allclose(y_b, jax.nn.sigmoid(x_b) * 12.0, atol=1e-5, rtol=1e-5)

    # Ragged multi-block grid (1-D path with a masked partial last block).
    x_m = jax.random.normal(k3, (3, 7, 89, 83), dtype=jnp.float32)
    y_m = coeff_sigmoid(x_m, coeff=12)
    jax.block_until_ready(y_m)
    assert jnp.allclose(y_m, jax.nn.sigmoid(x_m) * 12.0, atol=1e-5, rtol=1e-5)

    print("KERNEL_OK")
</pallas_src>

<mosaic_0001>
module attributes {stable_mosaic.version = 11 : i64} {
  func.func @_coeff_sigmoid_kernel(%arg0: i32, %arg1: memref<16x128xf32, #tpu.memory_space<vmem>>, %arg2: memref<16x128xf32, #tpu.memory_space<vmem>>) attributes {dimension_semantics = [#tpu.dimension_semantics<parallel>], iteration_bounds = array<i64: 1>, scalar_prefetch = 0 : i64, scratch_operands = 0 : i64, tpu.core_type = #tpu.core_type<tc>, window_params = [{transform_indices = @transform_0, window_bounds = array<i64: 16, 128>}, {transform_indices = @transform_1, window_bounds = array<i64: 16, 128>}]} {
    %c0 = arith.constant 0 : index
    %c0_0 = arith.constant 0 : index
    %0 = vector.load %arg1[%c0, %c0_0] : memref<16x128xf32, #tpu.memory_space<vmem>>, vector<16x128xf32>
    %1 = arith.negf %0 : vector<16x128xf32>
    %2 = math.exp %1 : vector<16x128xf32>
    %cst = arith.constant 1.000000e+00 : f32
    %3 = vector.broadcast %cst : f32 to vector<16x128xf32>
    %4 = arith.addf %3, %2 : vector<16x128xf32>
    %5 = arith.divf %3, %4 : vector<16x128xf32>
    %cst_1 = arith.constant 1.200000e+01 : f32
    %6 = vector.broadcast %cst_1 : f32 to vector<16x128xf32>
    %7 = arith.mulf %5, %6 : vector<16x128xf32>
    %c0_2 = arith.constant 0 : index
    %c0_3 = arith.constant 0 : index
    %8 = vector.load %arg2[%c0_2, %c0_3] : memref<16x128xf32, #tpu.memory_space<vmem>>, vector<16x128xf32>
    tpu.vector_store %arg2[%c0_2, %c0_3], %7 {strides = array<i32>} : memref<16x128xf32, #tpu.memory_space<vmem>>, vector<16x128xf32>,
    return
  }
  func.func @transform_0(%arg0: i32) -> (i32, i32) {
    %c0_i32 = arith.constant 0 : i32
    %c0_i32_0 = arith.constant 0 : i32
    return %arg0, %c0_i32 : i32, i32
  }
  func.func @transform_1(%arg0: i32) -> (i32, i32) {
    %c0_i32 = arith.constant 0 : i32
    %c0_i32_0 = arith.constant 0 : i32
    return %arg0, %c0_i32 : i32, i32
  }
}

</mosaic_0001>

<bundles_post_ra>
// kernel: tpu_custom_call.1
= control target key start
LH: loop header
LB: loop body
LE: loop exit
PB: predicated region body
PF: predicated region fallthrough
CT: control target
= control target key end

     0   :  { %6 = vsyncpa [#allocation3], 0  ;;  %s180_s0 = inlined_call_operand.hbm [shape: f32[16,128], index: 0, kind: input, shape index: {}]   ;;  %s181_s1 = inlined_call_operand.hbm [shape: f32[16,128], index: 1, kind: output, shape index: {}]  }
   0x1   :  { %7 = vsyncpa [#allocation4], 0  ;;  %s12_s8 = sshll.u32 %s180_s0, 4  ;;  %s154_s9 = smov [#allocation2]   ;;  %s13_s8 = int_to_ptr.hbm [resolvable:$true] %s12_s8 }
   0x2   :  { %s14_s10 = sshll.u32 %s154_s9, 4  ;;  %s155_s11 = smov 128   ;;  %s15_s10 = int_to_ptr.vmem [resolvable:$true] %s14_s10 }
   0x3   :  { %s156_s12 = smov 8  }
   0x4   :  { %20 = dma.hbm_to_vmem [thread:$0]  %s13_s8, 256, %s15_s10, [#allocation3], %s155_s11, %s155_s11, %s156_s12  }
   0x5   :  { %150 = dma.done.wait [#allocation3], 256  }
   0x6   :  { %151 = vsyncadd [#allocation3], 4294967040  ;;  %v25_v0 = vld [vmem:[#allocation2] sm:$0xff]  ;;  %v26_v1 = vld [vmem:[#allocation2 + $0x8] sm:$0xff]  ;;  %s157_s0 = smov [#allocation5]   ;;  %s75_s16 = sshll.u32 %s181_s1, 4  ;;  %s76_s16 = int_to_ptr.hbm [resolvable:$true] %s75_s16 }
   0x7   :  { %v88_v2 = vmul.f32 -1.442695, %v25_v0  ;;  %v89_v3 = vmul.f32 -1.442695, %v26_v1  ;;  %s73_s13 = sshll.u32 %s157_s0, 4  ;;  %s74_s13 = int_to_ptr.vmem [resolvable:$true] %s73_s13 }
   0x9   :  { %94 = vpow2.f32 %v88_v2 }
   0xa   :  { %96 = vpow2.f32 %v89_v3 }
   0xf   :  { %v95_v4 = vpop.eup %94 }
  0x10   :  { %v97_v5 = vpop.eup %96  ;;  %v33_v6 = vadd.f32 1.0, %v95_v4 }
  0x11   :  { %v34_v7 = vadd.f32 1.0, %v97_v5 }
  0x12   :  { %98 = vrcp.f32 %v33_v6  ;;  %vm40_vm0 = vweird.f32 %v33_v6  ;;  %v46_v11 = vand.u32 2147483648, %v33_v6  ;;  %v44_v14 = vand.u32 2147483647, %v33_v6 }
  0x13   :  { %100 = vrcp.f32 %v34_v7  ;;  %v61_v15 = vand.u32 2147483648, %v34_v7  ;;  %vm55_vm2 = vweird.f32 %v34_v7  ;;  %v59_v17 = vand.u32 2147483647, %v34_v7 }
  0x14   :  { %v47_v19 = vor.u32 1.1754944e-38, %v46_v11  ;;  %vm45_vm5 = vcmp.eq.f32.partialorder %v44_v14, 8.507059e+37 }
  0x15   :  { %v62_v22 = vor.u32 1.1754944e-38, %v61_v15  ;;  %vm60_vm7 = vcmp.eq.f32.partialorder %v59_v17, 8.507059e+37 }
  0x18   :  { %v99_v8 = vpop.eup %98 }
  0x19   :  { %v101_v9 = vpop.eup %100  ;;  %v36_v10 = vmul.f32 %v99_v8, %v33_v6  ;;  %vm41_vm1 = vweird.f32 %v99_v8 }
  0x1a   :  { %v51_v12 = vmul.f32 %v101_v9, %v34_v7  ;;  %vm56_vm3 = vweird.f32 %v101_v9  ;;  %vm42_vm4 = vmor %vm40_vm0, %vm41_vm1 }
  0x1b   :  { %v37_v13 = vsub.f32 1.0, %v36_v10  ;;  %vm57_vm6 = vmor %vm55_vm2, %vm56_vm3 }
  0x1c   :  { %v52_v16 = vsub.f32 1.0, %v51_v12 }
  0x1d   :  { %v38_v18 = vmul.f32 %v99_v8, %v37_v13 }
  0x1e   :  { %v53_v20 = vmul.f32 %v101_v9, %v52_v16 }
  0x1f   :  { %v39_v21 = vadd.f32 %v99_v8, %v38_v18 }
  0x20   :  { %v54_v23 = vadd.f32 %v101_v9, %v53_v20 }
  0x21   :  { %v43_v24 = vsel %vm42_vm4, %v99_v8, %v39_v21 }
  0x22   :  { %v48_v25 = vsel %vm45_vm5, %v47_v19, %v43_v24  ;;  %v58_v26 = vsel %vm57_vm6, %v101_v9, %v54_v23 }
  0x23   :  { %v65_v27 = vmul.f32 12.0, %v48_v25  ;;  %v63_v28 = vsel %vm60_vm7, %v62_v22, %v58_v26 }
  0x24   :  { %v66_v29 = vmul.f32 12.0, %v63_v28 }
  0x25   :  { %67 = vst [vmem:[#allocation5] sm:$0xff] %v65_v27 }
  0x26   :  { %68 = vst [vmem:[#allocation5 + $0x8] sm:$0xff] %v66_v29 }
  0x27   :  { %81 = dma.vmem_to_hbm [thread:$0]  %s74_s13, 256, %s76_s16, [#allocation4], %s155_s11, %s155_s11, %s156_s12  }
  0x28   :  { %152 = dma.done.wait [#allocation4], 256  }
  0x29   :  { %153 = vsyncadd [#allocation4], 4294967040 }
  0x2a   :  { %86 = vsyncpa [#allocation3], 1 }
  0x2b   :  { %87 = vsyncpa [#allocation4], 1 }

</bundles_post_ra>
